<compile_context>
chip_gen: v6e
topology: v6e:2x2x1
jax: 0.10.0
libtpu: 0.0.40
codegen_flags: <defaults>
</compile_context>

<pallas_src>
import jax
import jax.numpy as jnp
from jax.experimental import pallas as pl
from jax.experimental.pallas import tpu as pltpu

LATENT_SIZE = 48
LABEL_SIZE = 10
DEFAULT_ROW_TILE = 8192  # rows per grid step (label-major layout keeps VMEM small)


def _round_up(n, m):
    return ((n + m - 1) // m) * m


def _linear_softmax_kernel(x_ref, w_ref, b_ref, o_ref):
    """One (tb, latent) batch tile -> label-major (label, tb) softmax tile."""
    x = x_ref[...]                               # (tb, latent), f32 or bf16
    w = w_ref[...]                               # (label, latent), same dtype as x
    b = b_ref[...].astype(jnp.float32)           # (label, 1), VMEM-resident

    # (label, latent) x (tb, latent)^T -> (label, tb); MXU, f32 accumulation.
    logits = jax.lax.dot_general(
        w, x, (((1,), (1,)), ((), ())),
        preferred_element_type=jnp.float32) + b  # (label, tb), lane-dense

    # Numerically-stable softmax over the label axis (sublanes, per column).
    m = jnp.max(logits, axis=0, keepdims=True)   # (1, tb)  XLU sublane-reduce
    e = jnp.exp(logits - m)                      # EUP
    s = jnp.sum(e, axis=0, keepdims=True)        # (1, tb)

    # EUP approximate reciprocal + one Newton-Raphson step -> ~f32 precision
    # without a VPU divide sequence.
    inv = pl.reciprocal(s, approx=True)
    inv = inv * (2.0 - s * inv)

    o_ref[...] = (e * inv).astype(o_ref.dtype)


def _choose_row_tile(batch, max_tile):
    # Small batches: a single full-extent block (satisfies the (8,128) rule
    # via the "equals the full array dim" escape hatch).
    if batch <= 128:
        return batch
    # Multiple of 128 so the label-major output block is lane-aligned; cap so
    # there are >= 2 grid steps, letting dimension_semantics=("parallel",)
    # shard the batch across v7x's two TensorCores (no-op on v5e/v6e).
    two_step_cap = _round_up(-(-batch // 2), 128)
    return max(128, min(max_tile, two_step_cap))


def softmax_module(x, w, b, *, row_tile=DEFAULT_ROW_TILE):
    """Forward pass of the PyTorch module: softmax(x @ w.T + b, dim=1).

    x: (B, latent) f32 or bf16
    w: (label, latent)   -- PyTorch nn.Linear weight layout
    b: (label,)
    returns: (B, label) in x.dtype
    """
    B, latent = x.shape
    assert latent == LATENT_SIZE
    label = w.shape[0]
    assert w.shape == (label, latent) and b.shape == (label,)

    tb = _choose_row_tile(B, row_tile)
    grid = (pl.cdiv(B, tb),)

    # Weight matches x's dtype (bf16 x halves the dominant HBM read; MXU still
    # accumulates in f32). Bias stays f32, added post-matmul.
    w_k = w.astype(x.dtype)
    b_k = b.astype(jnp.float32).reshape(label, 1)

    out_lm = pl.pallas_call(
        _linear_softmax_kernel,
        out_shape=jax.ShapeDtypeStruct((label, B), x.dtype),
        grid=grid,
        in_specs=[
            pl.BlockSpec((tb, LATENT_SIZE), lambda i: (i, 0)),      # x: streamed
            pl.BlockSpec((label, LATENT_SIZE), lambda i: (0, 0)),   # w: resident
            pl.BlockSpec((label, 1), lambda i: (0, 0)),             # b: resident
        ],
        out_specs=pl.BlockSpec((label, tb), lambda i: (0, i)),
        compiler_params=pltpu.CompilerParams(
            dimension_semantics=("parallel",),  # shard batch across TCs on v7x
        ),
    )(x, w_k, b_k)

    # (label, B) -> (B, label): cheap wrapper-side transpose (~40 B/row f32),
    # far cheaper than masked 10-wide stores or 128-wide output padding.
    return out_lm.T


def init_params(key, latent_size=LATENT_SIZE, label_size=LABEL_SIZE):
    # Deterministic init mirroring torch.nn.Linear default:
    # U(-1/sqrt(in_features), 1/sqrt(in_features)); weight in PyTorch layout.
    kw, kb = jax.random.split(key)
    bound = 1.0 / jnp.sqrt(jnp.float32(latent_size))
    w = jax.random.uniform(kw, (label_size, latent_size), jnp.float32, -bound, bound)
    b = jax.random.uniform(kb, (label_size,), jnp.float32, -bound, bound)
    return w, b


def reference(x, w, b):
    logits = x.astype(jnp.float32) @ w.T.astype(jnp.float32) + b
    return jax.nn.softmax(logits, axis=1)


if __name__ == "__main__":
    key = jax.random.PRNGKey(0)
    kx, kx2, kp = jax.random.split(key, 3)
    w, b = init_params(kp)

    # Small-batch sanity test (single full-extent block, grid of 1).
    B = 8
    x = jax.random.normal(kx, (B, LATENT_SIZE), dtype=jnp.float32)
    out = jax.block_until_ready(softmax_module(x, w, b))
    ref = reference(x, w, b)
    assert out.shape == (B, LABEL_SIZE)
    assert jnp.allclose(out, ref, atol=1e-5, rtol=1e-5)
    assert jnp.allclose(jnp.sum(out, axis=1), jnp.ones((B,)), atol=1e-5)

    # Ragged multi-step grid (tb=128 -> grid of 2, last block only 72 valid
    # rows), no wrapper-side padding or slicing.
    B2 = 200
    x2 = jax.random.normal(kx2, (B2, LATENT_SIZE), dtype=jnp.float32)
    out2 = jax.block_until_ready(softmax_module(x2, w, b))
    ref2 = reference(x2, w, b)
    assert out2.shape == (B2, LABEL_SIZE)
    assert jnp.allclose(out2, ref2, atol=1e-5, rtol=1e-5)
    assert jnp.allclose(jnp.sum(out2, axis=1), jnp.ones((B2,)), atol=1e-5)

    # bf16 activation path (halves the dominant HBM read; f32 MXU accumulate;
    # output is bf16, hence the looser tolerance).
    x3 = x2.astype(jnp.bfloat16)
    out3 = jax.block_until_ready(softmax_module(x3, w, b))
    assert out3.shape == (B2, LABEL_SIZE)
    assert out3.dtype == jnp.bfloat16
    assert jnp.allclose(out3.astype(jnp.float32), ref2, atol=2e-2, rtol=2e-2)

    print("KERNEL_OK")
</pallas_src>

<mosaic_0001>
module attributes {stable_mosaic.version = 11 : i64} {
  func.func @_linear_softmax_kernel(%arg0: i32, %arg1: memref<8x48xf32, #tpu.memory_space<vmem>>, %arg2: memref<10x48xf32, #tpu.memory_space<vmem>>, %arg3: memref<10x1xf32, #tpu.memory_space<vmem>>, %arg4: memref<10x8xf32, #tpu.memory_space<vmem>>) attributes {dimension_semantics = [#tpu.dimension_semantics<parallel>], iteration_bounds = array<i64: 1>, scalar_prefetch = 0 : i64, scratch_operands = 0 : i64, tpu.core_type = #tpu.core_type<tc>, window_params = [{transform_indices = @transform_0, window_bounds = array<i64: 8, 48>}, {pipeline_mode = #tpu.pipeline_mode<synchronous>, transform_indices = @transform_1, window_bounds = array<i64: 10, 48>}, {pipeline_mode = #tpu.pipeline_mode<synchronous>, transform_indices = @transform_2, window_bounds = array<i64: 10, 1>}, {transform_indices = @transform_3, window_bounds = array<i64: 10, 8>}]} {
    %c0 = arith.constant 0 : index
    %c0_0 = arith.constant 0 : index
    %0 = vector.load %arg1[%c0, %c0_0] : memref<8x48xf32, #tpu.memory_space<vmem>>, vector<8x48xf32>
    %c0_1 = arith.constant 0 : index
    %c0_2 = arith.constant 0 : index
    %1 = vector.load %arg2[%c0_1, %c0_2] : memref<10x48xf32, #tpu.memory_space<vmem>>, vector<10x48xf32>
    %c0_3 = arith.constant 0 : index
    %c0_4 = arith.constant 0 : index
    %2 = vector.load %arg3[%c0_3, %c0_4] : memref<10x1xf32, #tpu.memory_space<vmem>>, vector<10x1xf32>
    %cst = arith.constant dense<0.000000e+00> : vector<10x8xf32>
    %3 = tpu.matmul %1, %0, %cst {dimension_numbers = #tpu.dot_dimension_numbers<[1], [1], [0], [0], [0, 0, 1, 0], [], []>} : vector<10x48xf32>, vector<8x48xf32>, vector<10x8xf32> -> vector<10x8xf32>
    %4 = vector.broadcast %2 : vector<10x1xf32> to vector<10x8xf32>
    %5 = arith.addf %3, %4 : vector<10x8xf32>
    %cst_5 = arith.constant dense<0xFF800000> : vector<8xf32>
    %6 = vector.multi_reduction <maximumf>, %5, %cst_5 [0] : vector<10x8xf32> to vector<8xf32>
    %7 = vector.shape_cast %6 : vector<8xf32> to vector<1x8xf32>
    %8 = vector.broadcast %7 : vector<1x8xf32> to vector<10x8xf32>
    %9 = arith.subf %5, %8 : vector<10x8xf32>
    %10 = math.exp %9 : vector<10x8xf32>
    %cst_6 = arith.constant dense<0.000000e+00> : vector<8xf32>
    %11 = vector.multi_reduction <add>, %10, %cst_6 [0] : vector<10x8xf32> to vector<8xf32>
    %12 = vector.shape_cast %11 : vector<8xf32> to vector<1x8xf32>
    %13 = tpu.reciprocal %12 {approx = true} : vector<1x8xf32> -> vector<1x8xf32>
    %14 = arith.mulf %12, %13 : vector<1x8xf32>
    %cst_7 = arith.constant 2.000000e+00 : f32
    %15 = vector.broadcast %cst_7 : f32 to vector<1x8xf32>
    %16 = arith.subf %15, %14 : vector<1x8xf32>
    %17 = arith.mulf %13, %16 : vector<1x8xf32>
    %18 = vector.broadcast %17 : vector<1x8xf32> to vector<10x8xf32>
    %19 = arith.mulf %10, %18 : vector<10x8xf32>
    %c0_8 = arith.constant 0 : index
    %c0_9 = arith.constant 0 : index
    %20 = vector.load %arg4[%c0_8, %c0_9] : memref<10x8xf32, #tpu.memory_space<vmem>>, vector<10x8xf32>
    tpu.vector_store %arg4[%c0_8, %c0_9], %19 {strides = array<i32>} : memref<10x8xf32, #tpu.memory_space<vmem>>, vector<10x8xf32>,
    return
  }
  func.func @transform_0(%arg0: i32) -> (i32, i32) {
    %c0_i32 = arith.constant 0 : i32
    %c0_i32_0 = arith.constant 0 : i32
    return %arg0, %c0_i32 : i32, i32
  }
  func.func @transform_1(%arg0: i32) -> (i32, i32) {
    %c0_i32 = arith.constant 0 : i32
    %c0_i32_0 = arith.constant 0 : i32
    %c0_i32_1 = arith.constant 0 : i32
    return %c0_i32, %c0_i32_0 : i32, i32
  }
  func.func @transform_2(%arg0: i32) -> (i32, i32) {
    %c0_i32 = arith.constant 0 : i32
    %c0_i32_0 = arith.constant 0 : i32
    %c0_i32_1 = arith.constant 0 : i32
    return %c0_i32, %c0_i32_0 : i32, i32
  }
  func.func @transform_3(%arg0: i32) -> (i32, i32) {
    %c0_i32 = arith.constant 0 : i32
    %c0_i32_0 = arith.constant 0 : i32
    return %c0_i32, %arg0 : i32, i32
  }
}

</mosaic_0001>

<bundles_post_ra>
// kernel: tpu_custom_call.1
= control target key start
LH: loop header
LB: loop body
LE: loop exit
PB: predicated region body
PF: predicated region fallthrough
CT: control target
= control target key end

     0   :  { %8 = vsyncpa [#allocation3], 0  ;;  %s207_s12 = smov [#allocation2]   ;;  %s256_s0 = inlined_call_operand.hbm [shape: f32[8,48], index: 0, kind: input, shape index: {}]   ;;  %s257_s1 = inlined_call_operand.vmem [shape: f32[10,48], index: 1, kind: input, shape index: {}]   ;;  %s258_s2 = inlined_call_operand.vmem [shape: f32[10,1], index: 2, kind: input, shape index: {}]   ;;  %s259_s3 = inlined_call_operand.vmem [shape: f32[10,8], index: 3, kind: output, shape index: {}]  }
   0x1   :  { %s15_s13 = sshll.u32 %s207_s12, 4  ;;  %s16_s13 = int_to_ptr.vmem [resolvable:$true] %s15_s13 }
   0x2   :  { %s193_s14 = scalar_lea.vmem %s16_s13, 128  ;;  %p198_p1 = scmp.lt.s32.totalorder %s16_s13, %s16_s13 }
   0x3   :  { %p194_p0 = scmp.ne.s32.totalorder %s16_s13, %s193_s14  ;;  %p199_p2 = scmp.lt.s32.totalorder %s193_s14, %s193_s14 }
   0x5   :  { %p200_p3 = por %p199_p2, %p198_p1 }
   0x7   :  { %p201_p4 = pnand %p200_p3, %p194_p0 }
   0x9   :  { %204 = shalt.err (!%p201_p4)
}
   0xa   :  { %18 = dma.hbm_to_vmem [thread:$0]  %s256_s0, 128, %s16_s13, [#allocation3]  }
   0xb   :  { %205 = dma.done.wait [#allocation3], 128  }
   0xc   :  { %206 = vsyncadd [#allocation3], 4294967168  ;;  %v208_v0 = vmov 0   ;;  %vm41_vm0 = vcmask 392192   ;;  %v26_v1 = vld [vmem:[#allocation2] sm:$0xff]  ;;  %vm128_vm1 = vcmask 58368  }
   0xd   :  { %178 = vset.pattern.permute.xlu0 %v208_v0  ;;  %v27_v2 = vld [vmem:[%s257_s1] sm:$0xff]  ;;  %171 = vmatprep.subr.msk.mxu0 %vm41_vm0, %v26_v1  ;;  %v28_v4 = vld [vmem:[%s257_s1 + $0x8] sm:$0x3]  ;;  %vm126_vm2 = vcmask 64512  }
   0xe   :  { %173 = vmatprep.mubr.msk.f32.mxu0 %vm41_vm0, %v27_v2  ;;  %v29_v3 = vld [vmem:[%s258_s2] sm:$0xff]  ;;  %172 = vmatpush3.xpose.msk.msra.mxu0 %vm41_vm0, %v26_v1  ;;  %v30_v5 = vld [vmem:[%s258_s2 + $0x8] sm:$0x3] }
   0xf   :  { %33 = vperm.xlu0 %178, %v29_v3  }
  0x11   :  { %174 = vmatmul.mubr.msk.f32.vlgmr.msra.gmra.mxu0 %vm41_vm0, %v28_v4 }
  0x13   :  { %38 = vperm.xlu0 %178, %v30_v5  }
  0x8a   :  { %v34_v6 = vpop.permute.xlu0 %33 }
  0x8e   :  { %v39_v7 = vpop.permute.xlu0 %38 }
  0xd1   :  { %v175_v8 = vpop.f32.mrf.mxu0 }
  0xd2   :  { %v123_v9 = vadd.f32 %v175_v8, %v39_v7 }
  0xd3   :  { %v117_v10 = vpop.f32.mrf.mxu0 }
  0xd4   :  { %v118_v11 = vadd.f32 %v117_v10, %v34_v6  ;;  %v129_v12 = vsel %vm128_vm1, %v123_v9, -inf }
  0xd6   :  { %v127_v13 = vsel %vm126_vm2, %v118_v11, -inf }
  0xd7   :  { %v130_v14 = vmax.f32 %v127_v13, %v129_v12 }
  0xd9   :  { %v131_v15 = vrot.slane %v130_v14, 4 }
  0xdb   :  { %v132_v16 = vmax.f32 %v130_v14, %v131_v15 }
  0xdd   :  { %v133_v17 = vrot.slane %v132_v16, 2 }
  0xdf   :  { %v134_v18 = vmax.f32 %v132_v16, %v133_v17 }
  0xe1   :  { %v135_v19 = vrot.slane %v134_v18, 1 }
  0xe3   :  { %v136_v20 = vmax.f32 %v134_v18, %v135_v19 }
  0xe5   :  { %v137_v21 = vsub.f32 %v118_v11, %v136_v20  ;;  %v138_v22 = vsub.f32 %v123_v9, %v136_v20 }
  0xe7   :  { %v139_v23 = vmul.f32 1.442695, %v137_v21  ;;  %v141_v24 = vmul.f32 1.442695, %v138_v22 }
  0xe9   :  { %179 = vpow2.f32 %v139_v23 }
  0xea   :  { %181 = vpow2.f32 %v141_v24 }
  0xf6   :  { %v180_v25 = vpop.eup %179 }
  0xf7   :  { %v182_v26 = vpop.eup %181  ;;  %v143_v27 = vsel %vm126_vm2, %v180_v25, 0.0 }
  0xf8   :  { %v144_v28 = vsel %vm128_vm1, %v182_v26, 0.0 }
  0xf9   :  { %v145_v29 = vadd.f32 %v144_v28, %v143_v27 }
  0xfb   :  { %v146_v30 = vrot.slane %v145_v29, 4 }
  0xfd   :  { %v147_v31 = vadd.f32 %v146_v30, %v145_v29 }
  0xff   :  { %v148_v32 = vrot.slane %v147_v31, 2 }
 0x101   :  { %v149_v33 = vadd.f32 %v148_v32, %v147_v31 }
 0x103   :  { %v150_v34 = vrot.slane %v149_v33, 1 }
 0x105   :  { %v151_v35 = vadd.f32 %v150_v34, %v149_v33 }
 0x107   :  { %183 = vrcp.f32 %v151_v35 }
 0x114   :  { %v184_v36 = vpop.eup %183 }
 0x115   :  { %v153_v37 = vmul.f32 %v184_v36, %v151_v35 }
 0x117   :  { %v154_v38 = vsub.f32 2.0, %v153_v37 }
 0x119   :  { %v155_v39 = vmul.f32 %v184_v36, %v154_v38 }
 0x11b   :  { %v156_v40 = vmul.f32 %v180_v25, %v155_v39  ;;  %v157_v41 = vmul.f32 %v182_v26, %v155_v39 }
 0x11d   :  { %158 = vst.msk [vmem:[%s259_s3] sm:$0xff] %vm126_vm2, %v156_v40 }
 0x11e   :  { %159 = vst.msk [vmem:[%s259_s3 + $0x8] sm:$0x3] %vm128_vm1, %v157_v41 }
 0x11f   :  { %164 = vsyncpa [#allocation3], 1 }

</bundles_post_ra>
